<compile_context>
chip_gen: v7x
topology: tpu7x:2x2x1
jax: 0.10.0
libtpu: 0.0.40
codegen_flags: <defaults>
</compile_context>

<pallas_src>
import numpy as np

import jax
import jax.numpy as jnp
from jax.experimental import pallas as pl
from jax.experimental.pallas import tpu as pltpu  # noqa: F401  (TPU backend assumed)


HEAD_PAD = 8  # fused head Cout (1 + 4 = 5) zero-padded to one sublane group


def _round_up(x, m):
    return ((x + m - 1) // m) * m


# ----------------------------------------------------------------------------
# Single fused Pallas kernel: backbone conv1 -> heads1 -> conv2 -> heads2
# Layout: activations are [C, M] with M = N*H*W on the lane axis.
# ----------------------------------------------------------------------------
def _fused_forward_kernel(p1_ref, w1_ref, b1_ref, s_ref, w2_ref, b2_ref,
                          wh1_ref, bh1_ref, wh2_ref, bh2_ref,
                          o1_ref, o2_ref):
    f32 = jnp.float32
    bf16 = jnp.bfloat16

    # ---- backbone conv1 (3x3, s=2): g1[C1, M1] = relu(W1t @ patches1 + b1) --
    g1 = jnp.dot(w1_ref[...], p1_ref[...], preferred_element_type=f32)
    g1 = jnp.maximum(g1 + b1_ref[...], 0.0)          # fp32 epilogue (VPU)
    g1b = g1.astype(bf16)                            # bf16 operand for the MXU

    # ---- fused heads on grid 1: lane-dense [Cout_pad, M1] output ------------
    o1_ref[...] = (jnp.dot(wh1_ref[...], g1b, preferred_element_type=f32)
                   + bh1_ref[...])

    # ---- backbone conv2 (3x3, s=2) as 9 taps; the stride-2 spatial gather is
    #      expressed as a one-hot matmul so the MXU does it (no HBM im2col) ---
    n_taps = s_ref.shape[0]
    c2, m2 = b2_ref.shape[0], s_ref.shape[2]
    acc = jnp.zeros((c2, m2), f32)
    for t in range(n_taps):                          # static unroll (9 taps)
        gathered = jnp.dot(g1b, s_ref[t], preferred_element_type=f32)  # [C1,M2]
        acc = acc + jnp.dot(w2_ref[t], gathered.astype(bf16),
                            preferred_element_type=f32)               # [C2,M2]
    g2 = jnp.maximum(acc + b2_ref[...], 0.0)
    g2b = g2.astype(bf16)

    # ---- fused heads on grid 2 ----------------------------------------------
    o2_ref[...] = (jnp.dot(wh2_ref[...], g2b, preferred_element_type=f32)
                   + bh2_ref[...])


def _full_spec(shape):
    nd = len(shape)
    return pl.BlockSpec(shape, lambda i, _nd=nd: (0,) * _nd)


# ----------------------------------------------------------------------------
# Wrapper-side glue
# ----------------------------------------------------------------------------
def _im2col_T(x_nhwc, kh, kw, stride, pad, k_pad_to):
    """Transposed im2col of the raw input: [K_pad, N*Ho*Wo] (K ordered tap,c)."""
    x = jnp.pad(x_nhwc, ((0, 0), (pad, pad), (pad, pad), (0, 0)))
    n, hp, wp, c = x.shape
    ho = (hp - kh) // stride + 1
    wo = (wp - kw) // stride + 1
    taps = [x[:, i:i + stride * ho:stride, j:j + stride * wo:stride, :]
            for i in range(kh) for j in range(kw)]
    p = jnp.stack(taps, axis=0)                  # [T, N, Ho, Wo, C]
    p = jnp.transpose(p, (0, 4, 1, 2, 3))        # [T, C, N, Ho, Wo]
    p = p.reshape(kh * kw * c, n * ho * wo)      # [K, M]
    k = kh * kw * c
    if k_pad_to > k:
        p = jnp.pad(p, ((0, k_pad_to - k), (0, 0)))
    return p, ho, wo


def _onehot_gather_mats(n, h_in, w_in, h_out, w_out, kh, kw, stride, pad):
    """S[t, m_in, m_out] = 1 iff spatial input m_in is tap t of output m_out.

    Built with numpy at trace time -> baked into the program as a constant.
    Zero columns encode the zero padding of the conv.
    """
    m_in, m_out = n * h_in * w_in, n * h_out * w_out
    s = np.zeros((kh * kw, m_in, m_out), np.float32)
    for t in range(kh * kw):
        ki, kj = divmod(t, kw)
        for b in range(n):
            for oh in range(h_out):
                for ow in range(w_out):
                    ih = oh * stride + ki - pad
                    iw = ow * stride + kj - pad
                    if 0 <= ih < h_in and 0 <= iw < w_in:
                        s[t, b * h_in * w_in + ih * w_in + iw,
                          b * h_out * w_out + oh * w_out + ow] = 1.0
    return s


# ----------------------------------------------------------------------------
# Deterministic parameter construction + one-time packing for the kernel
# ----------------------------------------------------------------------------
def _init_conv(key, kh, kw, cin, cout):
    kw_, kb_ = jax.random.split(key)
    fan_in = kh * kw * cin
    w = jax.random.normal(kw_, (kh, kw, cin, cout), jnp.float32) / jnp.sqrt(fan_in)
    b = 0.01 * jax.random.normal(kb_, (cout,), jnp.float32)
    return w, b


def make_params(key, cin=4):
    ks = jax.random.split(key, 6)
    return {
        "bb1": _init_conv(ks[0], 3, 3, cin, 16),
        "bb2": _init_conv(ks[1], 3, 3, 16, 32),
        "scores1": _init_conv(ks[2], 1, 1, 16, 1),
        "bboxes1": _init_conv(ks[3], 1, 1, 16, 4),
        "scores2": _init_conv(ks[4], 1, 1, 32, 1),
        "bboxes2": _init_conv(ks[5], 1, 1, 32, 4),
    }


def pack_params(params):
    """One-time repack: transpose to [Cout, K], zero-pad to friendly sizes,
    fuse per-grid heads (scores ++ bboxes), cast matmul operands to bf16."""
    bf16, f32 = jnp.bfloat16, jnp.float32

    w1, b1 = params["bb1"]                       # [3,3,cin,16], [16]
    kh, kw, cin, c1 = w1.shape
    k1 = kh * kw * cin
    k1p = _round_up(k1, 8)
    w1t = w1.reshape(k1, c1).T                   # [16, 36]
    w1t = jnp.pad(w1t, ((0, 0), (0, k1p - k1)))  # [16, 40]

    w2, b2 = params["bb2"]                       # [3,3,16,32], [32]
    c2 = w2.shape[-1]
    w2t = w2.reshape(kh * kw, c1, c2).transpose(0, 2, 1)   # [9, 32, 16] (co, ci)

    def fuse_heads(names, c_in):
        ws = [params[nm][0].reshape(c_in, -1) for nm in names]
        bs = [params[nm][1] for nm in names]
        w = jnp.concatenate(ws, axis=1).T                   # [5, c_in]
        b = jnp.concatenate(bs, axis=0)                     # [5]
        w = jnp.pad(w, ((0, HEAD_PAD - w.shape[0]), (0, 0)))
        b = jnp.pad(b, (0, HEAD_PAD - b.shape[0]))
        return w, b.reshape(-1, 1)

    wh1, bh1 = fuse_heads(("scores1", "bboxes1"), c1)
    wh2, bh2 = fuse_heads(("scores2", "bboxes2"), c2)

    return {
        "w1t": w1t.astype(bf16), "b1": b1.reshape(-1, 1).astype(f32),
        "w2t": w2t.astype(bf16), "b2": b2.reshape(-1, 1).astype(f32),
        "wh1": wh1.astype(bf16), "bh1": bh1.astype(f32),
        "wh2": wh2.astype(bf16), "bh2": bh2.astype(f32),
    }


# ----------------------------------------------------------------------------
# The Model forward pass (single fused pallas_call)
# ----------------------------------------------------------------------------
def model_forward(packed, x_nchw):
    n, _, h, w = x_nchw.shape
    x = jnp.transpose(x_nchw, (0, 2, 3, 1)).astype(jnp.float32)   # NCHW -> NHWC

    k1p = packed["w1t"].shape[1]
    c1 = packed["w1t"].shape[0]
    c2 = packed["w2t"].shape[1]

    # conv1 patches of the raw input (wrapper glue; the input is read from HBM
    # exactly once either way).  Lane axis = M1 = N*H1*W1.
    p1t, h1, w1 = _im2col_T(x, 3, 3, 2, 1, k_pad_to=k1p)
    p1t = p1t.astype(jnp.bfloat16)
    m1 = n * h1 * w1

    # conv2 output geometry + one-hot gather matrices (trace-time constants)
    h2 = (h1 + 2 - 3) // 2 + 1
    w2 = (w1 + 2 - 3) // 2 + 1
    m2 = n * h2 * w2
    s_mats = jnp.asarray(_onehot_gather_mats(n, h1, w1, h2, w2, 3, 3, 2, 1),
                         jnp.bfloat16)

    operands = (p1t, packed["w1t"], packed["b1"], s_mats, packed["w2t"],
                packed["b2"], packed["wh1"], packed["bh1"],
                packed["wh2"], packed["bh2"])

    flops = 2 * (c1 * k1p * m1                              # conv1
                 + 9 * (c1 * m1 * m2 + c2 * c1 * m2)        # conv2 gather + taps
                 + HEAD_PAD * c1 * m1 + HEAD_PAD * c2 * m2)  # fused heads
    bytes_accessed = int(sum(int(np.prod(a.shape)) * a.dtype.itemsize
                             for a in operands)
                         + 4 * HEAD_PAD * (m1 + m2))

    out_shape = (jax.ShapeDtypeStruct((HEAD_PAD, m1), jnp.float32),
                 jax.ShapeDtypeStruct((HEAD_PAD, m2), jnp.float32))

    o1, o2 = pl.pallas_call(
        _fused_forward_kernel,
        out_shape=out_shape,
        grid=(1,),
        in_specs=[_full_spec(a.shape) for a in operands],
        out_specs=(_full_spec((HEAD_PAD, m1)), _full_spec((HEAD_PAD, m2))),
        cost_estimate=pl.CostEstimate(flops=flops, transcendentals=0,
                                      bytes_accessed=bytes_accessed),
    )(*operands)

    # [Cout_pad, N*H*W] -> NCHW, split fused heads back into scores / bboxes.
    def unpack(o, hh, ww):
        o = o[:5].reshape(5, n, hh, ww)
        o = jnp.transpose(o, (1, 0, 2, 3))
        return o[:, :1], o[:, 1:5]

    s1, bx1 = unpack(o1, h1, w1)
    s2, bx2 = unpack(o2, h2, w2)
    return {"scores1": s1, "bboxes1": bx1, "scores2": s2, "bboxes2": bx2}


# ----------------------------------------------------------------------------
# Pure-JAX reference (fp32, XLA convs) — same semantics as the PyTorch module
# ----------------------------------------------------------------------------
def reference_forward(params, x_nchw):
    x = jnp.transpose(x_nchw, (0, 2, 3, 1)).astype(jnp.float32)

    def conv(t, w, b, stride, pad):
        y = jax.lax.conv_general_dilated(
            t, w, window_strides=(stride, stride),
            padding=((pad, pad), (pad, pad)),
            dimension_numbers=("NHWC", "HWIO", "NHWC"))
        return y + b

    g1 = jax.nn.relu(conv(x, *params["bb1"], 2, 1))
    g2 = jax.nn.relu(conv(g1, *params["bb2"], 2, 1))
    xs = [g1, g2]
    multi_heads = [
        {"scores1": params["scores1"], "bboxes1": params["bboxes1"]},
        {"scores2": params["scores2"], "bboxes2": params["bboxes2"]},
    ]
    out = {}
    for g, heads in zip(xs, multi_heads):
        for name, (wh, bh) in heads.items():
            out[name] = jnp.transpose(conv(g, wh, bh, 1, 0), (0, 3, 1, 2))
    return out


if __name__ == "__main__":
    key = jax.random.PRNGKey(0)
    kp, kx = jax.random.split(key)

    params = make_params(kp, cin=4)
    packed = pack_params(params)                              # one-time repack
    x = jax.random.normal(kx, (2, 4, 16, 16), jnp.float32)    # NCHW input

    out = jax.jit(model_forward)(packed, x)
    out = jax.block_until_ready(out)

    ref = reference_forward(params, x)

    expected = {
        "scores1": (2, 1, 8, 8),
        "bboxes1": (2, 4, 8, 8),
        "scores2": (2, 1, 4, 4),
        "bboxes2": (2, 4, 4, 4),
    }
    for name, shp in expected.items():
        assert out[name].shape == shp, (name, out[name].shape, shp)
        assert jnp.all(jnp.isfinite(out[name]))
        # bf16 MXU operands with fp32 accumulation -> ~1% error vs fp32 ref
        assert jnp.allclose(out[name], ref[name], atol=5e-2, rtol=5e-2), name

    print("KERNEL_OK")
</pallas_src>

<mosaic_0001>
module attributes {stable_mosaic.version = 11 : i64} {
  func.func @_fused_forward_kernel(%arg0: i32, %arg1: memref<40x128xbf16, #tpu.memory_space<vmem>>, %arg2: memref<16x40xbf16, #tpu.memory_space<vmem>>, %arg3: memref<16x1xf32, #tpu.memory_space<vmem>>, %arg4: memref<9x128x32xbf16, #tpu.memory_space<vmem>>, %arg5: memref<9x32x16xbf16, #tpu.memory_space<vmem>>, %arg6: memref<32x1xf32, #tpu.memory_space<vmem>>, %arg7: memref<8x16xbf16, #tpu.memory_space<vmem>>, %arg8: memref<8x1xf32, #tpu.memory_space<vmem>>, %arg9: memref<8x32xbf16, #tpu.memory_space<vmem>>, %arg10: memref<8x1xf32, #tpu.memory_space<vmem>>, %arg11: memref<8x128xf32, #tpu.memory_space<vmem>>, %arg12: memref<8x32xf32, #tpu.memory_space<vmem>>) attributes {dimension_semantics = [#tpu.dimension_semantics<arbitrary>], iteration_bounds = array<i64: 1>, scalar_prefetch = 0 : i64, scratch_operands = 0 : i64, tpu.core_type = #tpu.core_type<tc>, window_params = [{pipeline_mode = #tpu.pipeline_mode<synchronous>, transform_indices = @transform_0, window_bounds = array<i64: 40, 128>}, {pipeline_mode = #tpu.pipeline_mode<synchronous>, transform_indices = @transform_1, window_bounds = array<i64: 16, 40>}, {pipeline_mode = #tpu.pipeline_mode<synchronous>, transform_indices = @transform_2, window_bounds = array<i64: 16, 1>}, {pipeline_mode = #tpu.pipeline_mode<synchronous>, transform_indices = @transform_3, window_bounds = array<i64: 9, 128, 32>}, {pipeline_mode = #tpu.pipeline_mode<synchronous>, transform_indices = @transform_4, window_bounds = array<i64: 9, 32, 16>}, {pipeline_mode = #tpu.pipeline_mode<synchronous>, transform_indices = @transform_5, window_bounds = array<i64: 32, 1>}, {pipeline_mode = #tpu.pipeline_mode<synchronous>, transform_indices = @transform_6, window_bounds = array<i64: 8, 16>}, {pipeline_mode = #tpu.pipeline_mode<synchronous>, transform_indices = @transform_7, window_bounds = array<i64: 8, 1>}, {pipeline_mode = #tpu.pipeline_mode<synchronous>, transform_indices = @transform_8, window_bounds = array<i64: 8, 32>}, {pipeline_mode = #tpu.pipeline_mode<synchronous>, transform_indices = @transform_9, window_bounds = array<i64: 8, 1>}, {pipeline_mode = #tpu.pipeline_mode<synchronous>, transform_indices = @transform_10, window_bounds = array<i64: 8, 128>}, {pipeline_mode = #tpu.pipeline_mode<synchronous>, transform_indices = @transform_11, window_bounds = array<i64: 8, 32>}]} {
    %c0 = arith.constant 0 : index
    %c0_0 = arith.constant 0 : index
    %0 = vector.load %arg2[%c0, %c0_0] : memref<16x40xbf16, #tpu.memory_space<vmem>>, vector<16x40xbf16>
    %c0_1 = arith.constant 0 : index
    %c0_2 = arith.constant 0 : index
    %1 = vector.load %arg1[%c0_1, %c0_2] : memref<40x128xbf16, #tpu.memory_space<vmem>>, vector<40x128xbf16>
    %cst = arith.constant dense<0.000000e+00> : vector<16x128xf32>
    %2 = tpu.matmul %0, %1, %cst {dimension_numbers = #tpu.dot_dimension_numbers<[1], [0], [0], [1], [0, 0, 1, 1], [], []>} : vector<16x40xbf16>, vector<40x128xbf16>, vector<16x128xf32> -> vector<16x128xf32>
    %c0_3 = arith.constant 0 : index
    %c0_4 = arith.constant 0 : index
    %3 = vector.load %arg3[%c0_3, %c0_4] : memref<16x1xf32, #tpu.memory_space<vmem>>, vector<16x1xf32>
    %4 = vector.broadcast %3 : vector<16x1xf32> to vector<16x128xf32>
    %5 = arith.addf %2, %4 : vector<16x128xf32>
    %cst_5 = arith.constant 0.000000e+00 : f32
    %6 = vector.broadcast %cst_5 : f32 to vector<16x128xf32>
    %7 = arith.maximumf %5, %6 : vector<16x128xf32>
    %8 = arith.truncf %7 : vector<16x128xf32> to vector<16x128xbf16>
    %c0_6 = arith.constant 0 : index
    %c0_7 = arith.constant 0 : index
    %9 = vector.load %arg7[%c0_6, %c0_7] : memref<8x16xbf16, #tpu.memory_space<vmem>>, vector<8x16xbf16>
    %cst_8 = arith.constant dense<0.000000e+00> : vector<8x128xf32>
    %10 = tpu.matmul %9, %8, %cst_8 {dimension_numbers = #tpu.dot_dimension_numbers<[1], [0], [0], [1], [0, 0, 1, 1], [], []>} : vector<8x16xbf16>, vector<16x128xbf16>, vector<8x128xf32> -> vector<8x128xf32>
    %c0_9 = arith.constant 0 : index
    %c0_10 = arith.constant 0 : index
    %11 = vector.load %arg8[%c0_9, %c0_10] : memref<8x1xf32, #tpu.memory_space<vmem>>, vector<8x1xf32>
    %12 = vector.broadcast %11 : vector<8x1xf32> to vector<8x128xf32>
    %13 = arith.addf %10, %12 : vector<8x128xf32>
    %c0_11 = arith.constant 0 : index
    %c0_12 = arith.constant 0 : index
    %14 = vector.load %arg11[%c0_11, %c0_12] : memref<8x128xf32, #tpu.memory_space<vmem>>, vector<8x128xf32>
    tpu.vector_store %arg11[%c0_11, %c0_12], %13 {strides = array<i32>} : memref<8x128xf32, #tpu.memory_space<vmem>>, vector<8x128xf32>,
    %cst_13 = arith.constant 0.000000e+00 : f32
    %15 = vector.broadcast %cst_13 : f32 to vector<32x32xf32>
    %c0_14 = arith.constant 0 : index
    %c0_15 = arith.constant 0 : index
    %c0_16 = arith.constant 0 : index
    %16 = vector.load %arg4[%c0_14, %c0_15, %c0_16] : memref<9x128x32xbf16, #tpu.memory_space<vmem>>, vector<1x128x32xbf16>
    %17 = vector.shape_cast %16 : vector<1x128x32xbf16> to vector<128x32xbf16>
    %cst_17 = arith.constant dense<0.000000e+00> : vector<16x32xf32>
    %18 = tpu.matmul %8, %17, %cst_17 {dimension_numbers = #tpu.dot_dimension_numbers<[1], [0], [0], [1], [0, 0, 1, 1], [], []>} : vector<16x128xbf16>, vector<128x32xbf16>, vector<16x32xf32> -> vector<16x32xf32>
    %c0_18 = arith.constant 0 : index
    %c0_19 = arith.constant 0 : index
    %c0_20 = arith.constant 0 : index
    %19 = vector.load %arg5[%c0_18, %c0_19, %c0_20] : memref<9x32x16xbf16, #tpu.memory_space<vmem>>, vector<1x32x16xbf16>
    %20 = vector.shape_cast %19 : vector<1x32x16xbf16> to vector<32x16xbf16>
    %21 = arith.truncf %18 : vector<16x32xf32> to vector<16x32xbf16>
    %cst_21 = arith.constant dense<0.000000e+00> : vector<32x32xf32>
    %22 = tpu.matmul %20, %21, %cst_21 {dimension_numbers = #tpu.dot_dimension_numbers<[1], [0], [0], [1], [0, 0, 1, 1], [], []>} : vector<32x16xbf16>, vector<16x32xbf16>, vector<32x32xf32> -> vector<32x32xf32>
    %23 = arith.addf %15, %22 : vector<32x32xf32>
    %c1 = arith.constant 1 : index
    %c0_22 = arith.constant 0 : index
    %c0_23 = arith.constant 0 : index
    %24 = vector.load %arg4[%c1, %c0_22, %c0_23] : memref<9x128x32xbf16, #tpu.memory_space<vmem>>, vector<1x128x32xbf16>
    %25 = vector.shape_cast %24 : vector<1x128x32xbf16> to vector<128x32xbf16>
    %cst_24 = arith.constant dense<0.000000e+00> : vector<16x32xf32>
    %26 = tpu.matmul %8, %25, %cst_24 {dimension_numbers = #tpu.dot_dimension_numbers<[1], [0], [0], [1], [0, 0, 1, 1], [], []>} : vector<16x128xbf16>, vector<128x32xbf16>, vector<16x32xf32> -> vector<16x32xf32>
    %c1_25 = arith.constant 1 : index
    %c0_26 = arith.constant 0 : index
    %c0_27 = arith.constant 0 : index
    %27 = vector.load %arg5[%c1_25, %c0_26, %c0_27] : memref<9x32x16xbf16, #tpu.memory_space<vmem>>, vector<1x32x16xbf16>
    %28 = vector.shape_cast %27 : vector<1x32x16xbf16> to vector<32x16xbf16>
    %29 = arith.truncf %26 : vector<16x32xf32> to vector<16x32xbf16>
    %cst_28 = arith.constant dense<0.000000e+00> : vector<32x32xf32>
    %30 = tpu.matmul %28, %29, %cst_28 {dimension_numbers = #tpu.dot_dimension_numbers<[1], [0], [0], [1], [0, 0, 1, 1], [], []>} : vector<32x16xbf16>, vector<16x32xbf16>, vector<32x32xf32> -> vector<32x32xf32>
    %31 = arith.addf %23, %30 : vector<32x32xf32>
    %c2 = arith.constant 2 : index
    %c0_29 = arith.constant 0 : index
    %c0_30 = arith.constant 0 : index
    %32 = vector.load %arg4[%c2, %c0_29, %c0_30] : memref<9x128x32xbf16, #tpu.memory_space<vmem>>, vector<1x128x32xbf16>
    %33 = vector.shape_cast %32 : vector<1x128x32xbf16> to vector<128x32xbf16>
    %cst_31 = arith.constant dense<0.000000e+00> : vector<16x32xf32>
    %34 = tpu.matmul %8, %33, %cst_31 {dimension_numbers = #tpu.dot_dimension_numbers<[1], [0], [0], [1], [0, 0, 1, 1], [], []>} : vector<16x128xbf16>, vector<128x32xbf16>, vector<16x32xf32> -> vector<16x32xf32>
    %c2_32 = arith.constant 2 : index
    %c0_33 = arith.constant 0 : index
    %c0_34 = arith.constant 0 : index
    %35 = vector.load %arg5[%c2_32, %c0_33, %c0_34] : memref<9x32x16xbf16, #tpu.memory_space<vmem>>, vector<1x32x16xbf16>
    %36 = vector.shape_cast %35 : vector<1x32x16xbf16> to vector<32x16xbf16>
    %37 = arith.truncf %34 : vector<16x32xf32> to vector<16x32xbf16>
    %cst_35 = arith.constant dense<0.000000e+00> : vector<32x32xf32>
    %38 = tpu.matmul %36, %37, %cst_35 {dimension_numbers = #tpu.dot_dimension_numbers<[1], [0], [0], [1], [0, 0, 1, 1], [], []>} : vector<32x16xbf16>, vector<16x32xbf16>, vector<32x32xf32> -> vector<32x32xf32>
    %39 = arith.addf %31, %38 : vector<32x32xf32>
    %c3 = arith.constant 3 : index
    %c0_36 = arith.constant 0 : index
    %c0_37 = arith.constant 0 : index
    %40 = vector.load %arg4[%c3, %c0_36, %c0_37] : memref<9x128x32xbf16, #tpu.memory_space<vmem>>, vector<1x128x32xbf16>
    %41 = vector.shape_cast %40 : vector<1x128x32xbf16> to vector<128x32xbf16>
    %cst_38 = arith.constant dense<0.000000e+00> : vector<16x32xf32>
    %42 = tpu.matmul %8, %41, %cst_38 {dimension_numbers = #tpu.dot_dimension_numbers<[1], [0], [0], [1], [0, 0, 1, 1], [], []>} : vector<16x128xbf16>, vector<128x32xbf16>, vector<16x32xf32> -> vector<16x32xf32>
    %c3_39 = arith.constant 3 : index
    %c0_40 = arith.constant 0 : index
    %c0_41 = arith.constant 0 : index
    %43 = vector.load %arg5[%c3_39, %c0_40, %c0_41] : memref<9x32x16xbf16, #tpu.memory_space<vmem>>, vector<1x32x16xbf16>
    %44 = vector.shape_cast %43 : vector<1x32x16xbf16> to vector<32x16xbf16>
    %45 = arith.truncf %42 : vector<16x32xf32> to vector<16x32xbf16>
    %cst_42 = arith.constant dense<0.000000e+00> : vector<32x32xf32>
    %46 = tpu.matmul %44, %45, %cst_42 {dimension_numbers = #tpu.dot_dimension_numbers<[1], [0], [0], [1], [0, 0, 1, 1], [], []>} : vector<32x16xbf16>, vector<16x32xbf16>, vector<32x32xf32> -> vector<32x32xf32>
    %47 = arith.addf %39, %46 : vector<32x32xf32>
    %c4 = arith.constant 4 : index
    %c0_43 = arith.constant 0 : index
    %c0_44 = arith.constant 0 : index
    %48 = vector.load %arg4[%c4, %c0_43, %c0_44] : memref<9x128x32xbf16, #tpu.memory_space<vmem>>, vector<1x128x32xbf16>
    %49 = vector.shape_cast %48 : vector<1x128x32xbf16> to vector<128x32xbf16>
    %cst_45 = arith.constant dense<0.000000e+00> : vector<16x32xf32>
    %50 = tpu.matmul %8, %49, %cst_45 {dimension_numbers = #tpu.dot_dimension_numbers<[1], [0], [0], [1], [0, 0, 1, 1], [], []>} : vector<16x128xbf16>, vector<128x32xbf16>, vector<16x32xf32> -> vector<16x32xf32>
    %c4_46 = arith.constant 4 : index
    %c0_47 = arith.constant 0 : index
    %c0_48 = arith.constant 0 : index
    %51 = vector.load %arg5[%c4_46, %c0_47, %c0_48] : memref<9x32x16xbf16, #tpu.memory_space<vmem>>, vector<1x32x16xbf16>
    %52 = vector.shape_cast %51 : vector<1x32x16xbf16> to vector<32x16xbf16>
    %53 = arith.truncf %50 : vector<16x32xf32> to vector<16x32xbf16>
    %cst_49 = arith.constant dense<0.000000e+00> : vector<32x32xf32>
    %54 = tpu.matmul %52, %53, %cst_49 {dimension_numbers = #tpu.dot_dimension_numbers<[1], [0], [0], [1], [0, 0, 1, 1], [], []>} : vector<32x16xbf16>, vector<16x32xbf16>, vector<32x32xf32> -> vector<32x32xf32>
    %55 = arith.addf %47, %54 : vector<32x32xf32>
    %c5 = arith.constant 5 : index
    %c0_50 = arith.constant 0 : index
    %c0_51 = arith.constant 0 : index
    %56 = vector.load %arg4[%c5, %c0_50, %c0_51] : memref<9x128x32xbf16, #tpu.memory_space<vmem>>, vector<1x128x32xbf16>
    %57 = vector.shape_cast %56 : vector<1x128x32xbf16> to vector<128x32xbf16>
    %cst_52 = arith.constant dense<0.000000e+00> : vector<16x32xf32>
    %58 = tpu.matmul %8, %57, %cst_52 {dimension_numbers = #tpu.dot_dimension_numbers<[1], [0], [0], [1], [0, 0, 1, 1], [], []>} : vector<16x128xbf16>, vector<128x32xbf16>, vector<16x32xf32> -> vector<16x32xf32>
    %c5_53 = arith.constant 5 : index
    %c0_54 = arith.constant 0 : index
    %c0_55 = arith.constant 0 : index
    %59 = vector.load %arg5[%c5_53, %c0_54, %c0_55] : memref<9x32x16xbf16, #tpu.memory_space<vmem>>, vector<1x32x16xbf16>
    %60 = vector.shape_cast %59 : vector<1x32x16xbf16> to vector<32x16xbf16>
    %61 = arith.truncf %58 : vector<16x32xf32> to vector<16x32xbf16>
    %cst_56 = arith.constant dense<0.000000e+00> : vector<32x32xf32>
    %62 = tpu.matmul %60, %61, %cst_56 {dimension_numbers = #tpu.dot_dimension_numbers<[1], [0], [0], [1], [0, 0, 1, 1], [], []>} : vector<32x16xbf16>, vector<16x32xbf16>, vector<32x32xf32> -> vector<32x32xf32>
    %63 = arith.addf %55, %62 : vector<32x32xf32>
    %c6 = arith.constant 6 : index
    %c0_57 = arith.constant 0 : index
    %c0_58 = arith.constant 0 : index
    %64 = vector.load %arg4[%c6, %c0_57, %c0_58] : memref<9x128x32xbf16, #tpu.memory_space<vmem>>, vector<1x128x32xbf16>
    %65 = vector.shape_cast %64 : vector<1x128x32xbf16> to vector<128x32xbf16>
    %cst_59 = arith.constant dense<0.000000e+00> : vector<16x32xf32>
    %66 = tpu.matmul %8, %65, %cst_59 {dimension_numbers = #tpu.dot_dimension_numbers<[1], [0], [0], [1], [0, 0, 1, 1], [], []>} : vector<16x128xbf16>, vector<128x32xbf16>, vector<16x32xf32> -> vector<16x32xf32>
    %c6_60 = arith.constant 6 : index
    %c0_61 = arith.constant 0 : index
    %c0_62 = arith.constant 0 : index
    %67 = vector.load %arg5[%c6_60, %c0_61, %c0_62] : memref<9x32x16xbf16, #tpu.memory_space<vmem>>, vector<1x32x16xbf16>
    %68 = vector.shape_cast %67 : vector<1x32x16xbf16> to vector<32x16xbf16>
    %69 = arith.truncf %66 : vector<16x32xf32> to vector<16x32xbf16>
    %cst_63 = arith.constant dense<0.000000e+00> : vector<32x32xf32>
    %70 = tpu.matmul %68, %69, %cst_63 {dimension_numbers = #tpu.dot_dimension_numbers<[1], [0], [0], [1], [0, 0, 1, 1], [], []>} : vector<32x16xbf16>, vector<16x32xbf16>, vector<32x32xf32> -> vector<32x32xf32>
    %71 = arith.addf %63, %70 : vector<32x32xf32>
    %c7 = arith.constant 7 : index
    %c0_64 = arith.constant 0 : index
    %c0_65 = arith.constant 0 : index
    %72 = vector.load %arg4[%c7, %c0_64, %c0_65] : memref<9x128x32xbf16, #tpu.memory_space<vmem>>, vector<1x128x32xbf16>
    %73 = vector.shape_cast %72 : vector<1x128x32xbf16> to vector<128x32xbf16>
    %cst_66 = arith.constant dense<0.000000e+00> : vector<16x32xf32>
    %74 = tpu.matmul %8, %73, %cst_66 {dimension_numbers = #tpu.dot_dimension_numbers<[1], [0], [0], [1], [0, 0, 1, 1], [], []>} : vector<16x128xbf16>, vector<128x32xbf16>, vector<16x32xf32> -> vector<16x32xf32>
    %c7_67 = arith.constant 7 : index
    %c0_68 = arith.constant 0 : index
    %c0_69 = arith.constant 0 : index
    %75 = vector.load %arg5[%c7_67, %c0_68, %c0_69] : memref<9x32x16xbf16, #tpu.memory_space<vmem>>, vector<1x32x16xbf16>
    %76 = vector.shape_cast %75 : vector<1x32x16xbf16> to vector<32x16xbf16>
    %77 = arith.truncf %74 : vector<16x32xf32> to vector<16x32xbf16>
    %cst_70 = arith.constant dense<0.000000e+00> : vector<32x32xf32>
    %78 = tpu.matmul %76, %77, %cst_70 {dimension_numbers = #tpu.dot_dimension_numbers<[1], [0], [0], [1], [0, 0, 1, 1], [], []>} : vector<32x16xbf16>, vector<16x32xbf16>, vector<32x32xf32> -> vector<32x32xf32>
    %79 = arith.addf %71, %78 : vector<32x32xf32>
    %c8 = arith.constant 8 : index
    %c0_71 = arith.constant 0 : index
    %c0_72 = arith.constant 0 : index
    %80 = vector.load %arg4[%c8, %c0_71, %c0_72] : memref<9x128x32xbf16, #tpu.memory_space<vmem>>, vector<1x128x32xbf16>
    %81 = vector.shape_cast %80 : vector<1x128x32xbf16> to vector<128x32xbf16>
    %cst_73 = arith.constant dense<0.000000e+00> : vector<16x32xf32>
    %82 = tpu.matmul %8, %81, %cst_73 {dimension_numbers = #tpu.dot_dimension_numbers<[1], [0], [0], [1], [0, 0, 1, 1], [], []>} : vector<16x128xbf16>, vector<128x32xbf16>, vector<16x32xf32> -> vector<16x32xf32>
    %c8_74 = arith.constant 8 : index
    %c0_75 = arith.constant 0 : index
    %c0_76 = arith.constant 0 : index
    %83 = vector.load %arg5[%c8_74, %c0_75, %c0_76] : memref<9x32x16xbf16, #tpu.memory_space<vmem>>, vector<1x32x16xbf16>
    %84 = vector.shape_cast %83 : vector<1x32x16xbf16> to vector<32x16xbf16>
    %85 = arith.truncf %82 : vector<16x32xf32> to vector<16x32xbf16>
    %cst_77 = arith.constant dense<0.000000e+00> : vector<32x32xf32>
    %86 = tpu.matmul %84, %85, %cst_77 {dimension_numbers = #tpu.dot_dimension_numbers<[1], [0], [0], [1], [0, 0, 1, 1], [], []>} : vector<32x16xbf16>, vector<16x32xbf16>, vector<32x32xf32> -> vector<32x32xf32>
    %87 = arith.addf %79, %86 : vector<32x32xf32>
    %c0_78 = arith.constant 0 : index
    %c0_79 = arith.constant 0 : index
    %88 = vector.load %arg6[%c0_78, %c0_79] : memref<32x1xf32, #tpu.memory_space<vmem>>, vector<32x1xf32>
    %89 = vector.broadcast %88 : vector<32x1xf32> to vector<32x32xf32>
    %90 = arith.addf %87, %89 : vector<32x32xf32>
    %cst_80 = arith.constant 0.000000e+00 : f32
    %91 = vector.broadcast %cst_80 : f32 to vector<32x32xf32>
    %92 = arith.maximumf %90, %91 : vector<32x32xf32>
    %93 = arith.truncf %92 : vector<32x32xf32> to vector<32x32xbf16>
    %c0_81 = arith.constant 0 : index
    %c0_82 = arith.constant 0 : index
    %94 = vector.load %arg9[%c0_81, %c0_82] : memref<8x32xbf16, #tpu.memory_space<vmem>>, vector<8x32xbf16>
    %cst_83 = arith.constant dense<0.000000e+00> : vector<8x32xf32>
    %95 = tpu.matmul %94, %93, %cst_83 {dimension_numbers = #tpu.dot_dimension_numbers<[1], [0], [0], [1], [0, 0, 1, 1], [], []>} : vector<8x32xbf16>, vector<32x32xbf16>, vector<8x32xf32> -> vector<8x32xf32>
    %c0_84 = arith.constant 0 : index
    %c0_85 = arith.constant 0 : index
    %96 = vector.load %arg10[%c0_84, %c0_85] : memref<8x1xf32, #tpu.memory_space<vmem>>, vector<8x1xf32>
    %97 = vector.broadcast %96 : vector<8x1xf32> to vector<8x32xf32>
    %98 = arith.addf %95, %97 : vector<8x32xf32>
    %c0_86 = arith.constant 0 : index
    %c0_87 = arith.constant 0 : index
    %99 = vector.load %arg12[%c0_86, %c0_87] : memref<8x32xf32, #tpu.memory_space<vmem>>, vector<8x32xf32>
    tpu.vector_store %arg12[%c0_86, %c0_87], %98 {strides = array<i32>} : memref<8x32xf32, #tpu.memory_space<vmem>>, vector<8x32xf32>,
    return
  }
  func.func @transform_0(%arg0: i32) -> (i32, i32) {
    %c0_i32 = arith.constant 0 : i32
    %c0_i32_0 = arith.constant 0 : i32
    %c0_i32_1 = arith.constant 0 : i32
    return %c0_i32, %c0_i32_0 : i32, i32
  }
  func.func @transform_1(%arg0: i32) -> (i32, i32) {
    %c0_i32 = arith.constant 0 : i32
    %c0_i32_0 = arith.constant 0 : i32
    %c0_i32_1 = arith.constant 0 : i32
    return %c0_i32, %c0_i32_0 : i32, i32
  }
  func.func @transform_2(%arg0: i32) -> (i32, i32) {
    %c0_i32 = arith.constant 0 : i32
    %c0_i32_0 = arith.constant 0 : i32
    %c0_i32_1 = arith.constant 0 : i32
    return %c0_i32, %c0_i32_0 : i32, i32
  }
  func.func @transform_3(%arg0: i32) -> (i32, i32, i32) {
    %c0_i32 = arith.constant 0 : i32
    %c0_i32_0 = arith.constant 0 : i32
    %c0_i32_1 = arith.constant 0 : i32
    %c0_i32_2 = arith.constant 0 : i32
    return %c0_i32, %c0_i32_0, %c0_i32_1 : i32, i32, i32
  }
  func.func @transform_4(%arg0: i32) -> (i32, i32, i32) {
    %c0_i32 = arith.constant 0 : i32
    %c0_i32_0 = arith.constant 0 : i32
    %c0_i32_1 = arith.constant 0 : i32
    %c0_i32_2 = arith.constant 0 : i32
    return %c0_i32, %c0_i32_0, %c0_i32_1 : i32, i32, i32
  }
  func.func @transform_5(%arg0: i32) -> (i32, i32) {
    %c0_i32 = arith.constant 0 : i32
    %c0_i32_0 = arith.constant 0 : i32
    %c0_i32_1 = arith.constant 0 : i32
    return %c0_i32, %c0_i32_0 : i32, i32
  }
  func.func @transform_6(%arg0: i32) -> (i32, i32) {
    %c0_i32 = arith.constant 0 : i32
    %c0_i32_0 = arith.constant 0 : i32
    %c0_i32_1 = arith.constant 0 : i32
    return %c0_i32, %c0_i32_0 : i32, i32
  }
  func.func @transform_7(%arg0: i32) -> (i32, i32) {
    %c0_i32 = arith.constant 0 : i32
    %c0_i32_0 = arith.constant 0 : i32
    %c0_i32_1 = arith.constant 0 : i32
    return %c0_i32, %c0_i32_0 : i32, i32
  }
  func.func @transform_8(%arg0: i32) -> (i32, i32) {
    %c0_i32 = arith.constant 0 : i32
    %c0_i32_0 = arith.constant 0 : i32
    %c0_i32_1 = arith.constant 0 : i32
    return %c0_i32, %c0_i32_0 : i32, i32
  }
  func.func @transform_9(%arg0: i32) -> (i32, i32) {
    %c0_i32 = arith.constant 0 : i32
    %c0_i32_0 = arith.constant 0 : i32
    %c0_i32_1 = arith.constant 0 : i32
    return %c0_i32, %c0_i32_0 : i32, i32
  }
  func.func @transform_10(%arg0: i32) -> (i32, i32) {
    %c0_i32 = arith.constant 0 : i32
    %c0_i32_0 = arith.constant 0 : i32
    %c0_i32_1 = arith.constant 0 : i32
    return %c0_i32, %c0_i32_0 : i32, i32
  }
  func.func @transform_11(%arg0: i32) -> (i32, i32) {
    %c0_i32 = arith.constant 0 : i32
    %c0_i32_0 = arith.constant 0 : i32
    %c0_i32_1 = arith.constant 0 : i32
    return %c0_i32, %c0_i32_0 : i32, i32
  }
}

</mosaic_0001>

<bundles_post_ra>
// kernel: model_forward.1
= control target key start
LH: loop header
LB: loop body
LE: loop exit
PB: predicated region body
PF: predicated region fallthrough
CT: control target
= control target key end

     0   :  { %v2675_v0 = vmov 0.0   ;;  %vm2676_vm0 = vmmov 0   ;;  %v2677_v2 = vmov 0   ;;  %vm81_vm1 = vcmask 1043456   ;;  %s3208_s0 = inlined_call_operand.vmem [shape: bf16[40,128], index: 0, kind: input, shape index: {}]   ;;  %s3209_s2 = inlined_call_operand.vmem [shape: f32[16,1], index: 2, kind: input, shape index: {}]   ;;  %s3210_s1 = inlined_call_operand.vmem [shape: bf16[16,40], index: 1, kind: input, shape index: {}]   ;;  %s3211_s5 = inlined_call_operand.vmem [shape: f32[32,1], index: 5, kind: input, shape index: {}]   ;;  %s3212_s3 = inlined_call_operand.vmem [shape: bf16[9,128,32], index: 3, kind: input, shape index: {}]   ;;  %s3213_s7 = inlined_call_operand.vmem [shape: f32[8,1], index: 7, kind: input, shape index: {}]   ;;  %s3214_s6 = inlined_call_operand.vmem [shape: bf16[8,16], index: 6, kind: input, shape index: {}]   ;;  %s3215_s4 = inlined_call_operand.vmem [shape: bf16[9,32,16], index: 4, kind: input, shape index: {}]   ;;  %s3216_s10 = inlined_call_operand.vmem [shape: f32[8,128], index: 10, kind: output, shape index: {0}]   ;;  %s3217_s9 = inlined_call_operand.vmem [shape: f32[8,1], index: 9, kind: input, shape index: {}]   ;;  %s3218_s8 = inlined_call_operand.vmem [shape: bf16[8,32], index: 8, kind: input, shape index: {}]   ;;  %s3219_s11 = inlined_call_operand.vmem [shape: f32[8,32], index: 11, kind: output, shape index: {1}]  }
   0x1   :  { %2286 = vmatprep.subr.bf16.mxu0 %v2675_v0  ;;  %v2581_v1 = vld [vmem:[%s3208_s0] sm:$0xff]   ;;  %2292 = vmatprep.mubr.msk.bf16.mxu0 %vm2676_vm0, %v2675_v0  ;;  %v2582_v3 = vld [vmem:[%s3208_s0 + $0x8] sm:$0xff]   ;;  %v2583_v4 = vld [vmem:[%s3208_s0 + $0x10] ss:$0 sps:$4 sm:$0xff]   ;;  %vm77_vm2 = vcmask 326656   ;;  %vm136_vm3 = vcmask 130048  }
   0x2   :  { %2579 = vset.pattern.permute.xlu0 %v2677_v2  ;;  %2296 = vmatprep.subr.bf16.mxu1 %v2675_v0  ;;  %v45_v5 = vld [vmem:[%s3209_s2] sm:$0xff]  ;;  %v46_v6 = vld [vmem:[%s3209_s2 + $0x8] sm:$0xff]  ;;  %v83_v7 = vsel %vm81_vm1, %v2583_v4, 0  ;;  %v1802_v9 = vld [vmem:[%s3211_s5 + $0x10] sm:$0xff]  ;;  %vm1841_vm4 = vcmask 261120  }
   0x3   :  { %2287 = vmatpush3.bf16.msra.mxu0 %v2581_v1  ;;  %2298 = vmatprep.mubr.msk.bf16.mxu1 %vm2676_vm0, %v2675_v0  ;;  %v2584_v8 = vld [vmem:[%s3210_s1] sm:$0xff]   ;;  %v2586_v12 = vld [vmem:[%s3212_s3 + $0x48] sm:$0xff]   ;;  %v2587_v13 = vld [vmem:[%s3212_s3 + $0x50] sm:$0xff]  }
   0x4   :  { %2288 = vmatprep.subr.bf16.mxu0 %v2675_v0  ;;  %2580 = vset.pattern.permute.xlu1 %v2677_v2  ;;  %v2585_v10 = vld [vmem:[%s3212_s3 + $0x40] sm:$0xff]   ;;  %v2588_v14 = vld [vmem:[%s3212_s3 + $0x58] sm:$0xff]   ;;  %v2590_v16 = vld [vmem:[%s3212_s3 + $0x68] sm:$0xff]  }
   0x5   :  { %49 = vperm.xlu0 %2579, %v45_v5   ;;  %v130_v11 = vld [vmem:[%s3213_s7] sm:$0xff]  ;;  %v2591_v17 = vld [vmem:[%s3212_s3 + $0x70] sm:$0xff]   ;;  %v2592_v18 = vld [vmem:[%s3212_s3 + $0x78] sm:$0xff]  }
   0x6   :  { %v2589_v15 = vld [vmem:[%s3212_s3 + $0x60] sm:$0xff]   ;;  %v2594_v32 = vld [vmem:[%s3212_s3 + $0x8] sm:$0xff]   ;;  %v2595_v33 = vld [vmem:[%s3212_s3 + $0x10] sm:$0xff]  }
   0x7   :  { %2289 = vmatpush3.bf16.msra.mxu0 %v2582_v3  ;;  %v129_v30 = vld [vmem:[%s3214_s6] sm:$0xf]  ;;  %v2596_v34 = vld [vmem:[%s3212_s3 + $0x18] sm:$0xff]   ;;  %v2598_v36 = vld [vmem:[%s3212_s3 + $0x28] sm:$0xff]  }
   0x8   :  { %2290 = vmatprep.subr.bf16.mxu0 %v2675_v0  ;;  %v2593_v31 = vld [vmem:[%s3212_s3] sm:$0xff]   ;;  %v2599_v37 = vld [vmem:[%s3212_s3 + $0x30] sm:$0xff]   ;;  %v2600_v38 = vld [vmem:[%s3212_s3 + $0x38] sm:$0xff]  }
   0x9   :  { %54 = vperm.xlu0 %2579, %v46_v6   ;;  %v2597_v35 = vld [vmem:[%s3212_s3 + $0x20] sm:$0xff]   ;;  %v2601_v39 = vld [vmem:[%s3215_s4 + $0x10] sm:$0xff]   ;;  %v2602_v50 = vld [vmem:[%s3215_s4 + $0x18] sm:$0xff]  }
   0xa   :  { %v2603_v52 = vld [vmem:[%s3212_s3 + $0x80] sm:$0xff]   ;;  %v2604_v54 = vld [vmem:[%s3212_s3 + $0x88] sm:$0xff]   ;;  %v2605_v55 = vld [vmem:[%s3212_s3 + $0x90] sm:$0xff]  }
   0xb   :  { %2291 = vmatpush3.bf16.msra.mxu0 %v83_v7  ;;  %v2606_v56 = vld [vmem:[%s3212_s3 + $0x98] sm:$0xff]   ;;  %v2607_v57 = vld [vmem:[%s3212_s3 + $0xa0] sm:$0xff]   ;;  %v2608_v58 = vld [vmem:[%s3212_s3 + $0xa8] sm:$0xff]  }
   0xc   :  { %2322 = vmatprep.subr.bf16.mxu0 %v2675_v0  ;;  %v2609_v59 = vld [vmem:[%s3212_s3 + $0xb0] sm:$0xff]   ;;  %v2610_v60 = vld [vmem:[%s3212_s3 + $0xb8] sm:$0xff]   ;;  %v2611_v3 = vld [vmem:[%s3212_s3 + $0x100] sm:$0xff]  }
   0xd   :  { %1816 = vperm.xlu0 %2579, %v1802_v9   ;;  %v2612_v4 = vld [vmem:[%s3212_s3 + $0x108] sm:$0xff]   ;;  %v2613_v5 = vld [vmem:[%s3212_s3 + $0x110] sm:$0xff]   ;;  %v2614_v6 = vld [vmem:[%s3212_s3 + $0x118] sm:$0xff]  }
   0xe   :  { %2293 = vmatmul.mubr.msk.bf16.vlgmr.msra.gmra.mrb[0].mxu0 %vm77_vm2, %v2584_v8  ;;  %v2615_v7 = vld [vmem:[%s3212_s3 + $0x120] sm:$0xff]   ;;  %v2616_v8 = vld [vmem:[%s3212_s3 + $0x128] sm:$0xff]   ;;  %v2617_v9 = vld [vmem:[%s3212_s3 + $0x130] sm:$0xff]  }
   0xf   :  { %2323 = vmatpush3.bf16.msra.mxu0 %v2585_v10  ;;  %2338 = vmatprep.mubr.msk.bf16.mxu0 %vm2676_vm0, %v2675_v0  ;;  %v2618_v10 = vld [vmem:[%s3212_s3 + $0x138] sm:$0xff]  }
  0x10   :  { %2324 = vmatprep.subr.bf16.mxu0 %v2675_v0 }
  0x11   :  { %133 = vperm.xlu0 %2579, %v130_v11   ;;  %v2619_v11 = vld [vmem:[%s3212_s3 + $0x140] sm:$0xff]  }
  0x13   :  { %2325 = vmatpush3.bf16.msra.mxu0 %v2586_v12  ;;  %v2620_v12 = vld [vmem:[%s3212_s3 + $0x148] sm:$0xff]  }
  0x14   :  { %2326 = vmatprep.subr.bf16.mxu0 %v2675_v0 }
  0x17   :  { %2327 = vmatpush3.bf16.msra.mxu0 %v2587_v13  ;;  %v2621_v13 = vld [vmem:[%s3212_s3 + $0x150] sm:$0xff]  }
  0x18   :  { %2328 = vmatprep.subr.bf16.mxu0 %v2675_v0 }
  0x1b   :  { %2329 = vmatpush3.bf16.msra.mxu0 %v2588_v14  ;;  %v2622_v14 = vld [vmem:[%s3212_s3 + $0x158] sm:$0xff]  }
  0x1c   :  { %2330 = vmatprep.subr.bf16.mxu0 %v2675_v0 }
  0x1f   :  { %2331 = vmatpush3.bf16.msra.mxu0 %v2589_v15  ;;  %v2623_v15 = vld [vmem:[%s3212_s3 + $0x160] sm:$0xff]  }
  0x20   :  { %2332 = vmatprep.subr.bf16.mxu0 %v2675_v0 }
  0x23   :  { %2333 = vmatpush3.bf16.msra.mxu0 %v2590_v16  ;;  %v2624_v16 = vld [vmem:[%s3212_s3 + $0x168] sm:$0xff]  }
  0x24   :  { %2334 = vmatprep.subr.bf16.mxu0 %v2675_v0 }
  0x27   :  { %2335 = vmatpush3.bf16.msra.mxu0 %v2591_v17  ;;  %v2625_v17 = vld [vmem:[%s3212_s3 + $0x170] sm:$0xff]  }
  0x28   :  { %2336 = vmatprep.subr.bf16.mxu0 %v2675_v0 }
  0x2b   :  { %2337 = vmatpush3.bf16.msra.mxu0 %v2592_v18  ;;  %v2635_v18 = vld [vmem:[%s3215_s4] sm:$0xff]  }
  0x84   :  { %v50_v19 = vpop.permute.xlu0 %49 }
  0x88   :  { %v55_v23 = vpop.permute.xlu0 %54 }
  0x8c   :  { %v2851_v40 = vpop.permute.xlu0 %1816 }
  0x90   :  { %v134_v43 = vpop.permute.xlu0 %133 }
  0xe1   :  { %v119_v20 = vpop.f32.mrb[0].mxu0 }
  0xe2   :  { %v120_v21 = vadd.f32 %v119_v20, %v50_v19  ;;  %v2294_v22 = vpop.f32.mrb[1].mxu0  ;;  %v2636_v19 = vld [vmem:[%s3215_s4 + $0x8] sm:$0xff]   ;;  %v2626_v20 = vld [vmem:[%s3212_s3 + $0x178] sm:$0xff]  }
  0xe3   :  { %v122_v24 = vpop.f32.mrb[2].mxu0  ;;  %v2628_v22 = vld [vmem:[%s3212_s3 + $0x1c8] sm:$0xff]  }
  0xe4   :  { %v123_v25 = vadd.f32 %v122_v24, %v55_v23  ;;  %v2295_v26 = vpop.f32.mrb[3].mxu0  ;;  %v126_v27 = vmax.f32 %v120_v21, 0.0  ;;  %v2627_v21 = vld [vmem:[%s3212_s3 + $0x1c0] sm:$0xff]   ;;  %v2629_v23 = vld [vmem:[%s3212_s3 + $0x1d0] sm:$0xff]   ;;  %v2630_v24 = vld [vmem:[%s3212_s3 + $0x1d8] sm:$0xff]  }
  0xe5   :  { %v2632_v26 = vld [vmem:[%s3212_s3 + $0x1e8] sm:$0xff]  }
  0xe6   :  { %v127_v28 = vmax.f32 %v123_v25, 0.0  ;;  %v2631_v25 = vld [vmem:[%s3212_s3 + $0x1e0] sm:$0xff]  }
  0xe8   :  { %v2804_v29 = vpack.c.bf16 %v127_v28, %v126_v27  ;;  %v2633_v27 = vld [vmem:[%s3212_s3 + $0x1f0] sm:$0xff]   ;;  %v2634_v28 = vld [vmem:[%s3212_s3 + $0x1f8] sm:$0xff]  }
  0xea   :  { %2297 = vmatpush3.bf16.msra.mxu1 %v2804_v29  ;;  %2339 = vmatmul.mubr.bf16.vlgmr.msra.gmra.mrb[4].mxu0 %v2804_v29 }
  0xeb   :  { %2302 = vmatprep.subr.bf16.mxu1 %v2675_v0  ;;  %2344 = vmatprep.mubr.msk.bf16.mxu0 %vm136_vm3, %v2601_v39 }
  0xed   :  { %2299 = vmatmul.mubr.msk.bf16.vlgmr.msra.gmra.mrb[0].mxu1 %vm136_vm3, %v129_v30  ;;  %v2637_v30 = vld [vmem:[%s3215_s4 + $0x20] sm:$0xff]  }
  0xee   :  { %2303 = vmatpush3.bf16.msra.mxu1 %v2593_v31  ;;  %2318 = vmatprep.mubr.msk.bf16.mxu1 %vm2676_vm0, %v2675_v0 }
  0xef   :  { %2304 = vmatprep.subr.bf16.mxu1 %v2675_v0 }
  0xf2   :  { %2305 = vmatpush3.bf16.msra.mxu1 %v2594_v32 }
  0xf3   :  { %2306 = vmatprep.subr.bf16.mxu1 %v2675_v0 }
  0xf6   :  { %2307 = vmatpush3.bf16.msra.mxu1 %v2595_v33 }
  0xf7   :  { %2308 = vmatprep.subr.bf16.mxu1 %v2675_v0 }
  0xfa   :  { %2309 = vmatpush3.bf16.msra.mxu1 %v2596_v34 }
  0xfb   :  { %2310 = vmatprep.subr.bf16.mxu1 %v2675_v0 }
  0xfe   :  { %2311 = vmatpush3.bf16.msra.mxu1 %v2597_v35 }
  0xff   :  { %2312 = vmatprep.subr.bf16.mxu1 %v2675_v0 }
 0x102   :  { %2313 = vmatpush3.bf16.msra.mxu1 %v2598_v36 }
 0x103   :  { %2314 = vmatprep.subr.bf16.mxu1 %v2675_v0 }
 0x106   :  { %2315 = vmatpush3.bf16.msra.mxu1 %v2599_v37 }
 0x107   :  { %2316 = vmatprep.subr.bf16.mxu1 %v2675_v0 }
 0x10a   :  { %2317 = vmatpush3.bf16.msra.mxu1 %v2600_v38 }
 0x10d   :  { %2319 = vmatmul.mubr.bf16.vlgmr.msra.gmra.mrb[4].mxu1 %v2804_v29 }
 0x10e   :  { %2350 = vmatprep.mubr.msk.bf16.mxu1 %vm136_vm3, %v2635_v18  ;;  %v2658_v18 = vld [vmem:[%s3212_s3 + $0x1a8] sm:$0xff]  }
 0x1bd   :  { %v390_v41 = vpop.f32.mrb[4].mxu0 }
 0x1be   :  { %v2340_v42 = vpop.f32.mrb[5].mxu0 }
 0x1bf   :  { %v393_v44 = vpop.f32.mrb[6].mxu0  ;;  %v2639_v42 = vld [vmem:[%s3212_s3 + $0xc0] sm:$0xff]  }
 0x1c0   :  { %v402_v45 = vpack.c.bf16 %v393_v44, %v390_v41  ;;  %v174_v46 = vpop.f32.mrb[0].mxu1  ;;  %v2341_v47 = vpop.f32.mrb[7].mxu0  ;;  %v2638_v41 = vld [vmem:[%s3215_s4 + $0x28] sm:$0xff]   ;;  %v2641_v44 = vld [vmem:[%s3212_s3 + $0xd0] sm:$0xff]  }
 0x1c1   :  { %v175_v48 = vadd.f32 %v174_v46, %v134_v43  ;;  %v2300_v49 = vpop.f32.mrb[1].mxu1  ;;  %v2640_v43 = vld [vmem:[%s3212_s3 + $0xc8] sm:$0xff]   ;;  %v2643_v46 = vld [vmem:[%s3212_s3 + $0xe0] sm:$0xff]  }
 0x1c2   :  { %2342 = vmatprep.subr.bf16.mxu0 %v402_v45  ;;  %v177_v51 = vpop.f32.mrb[2].mxu1  ;;  %v2644_v47 = vld [vmem:[%s3212_s3 + $0xe8] sm:$0xff]  }
 0x1c3   :  { %180 = vst [vmem:[%s3216_s10] sm:$0xff] %v175_v48  ;;  %2343 = vmatpush3.bf16.msra.mxu0 %v402_v45  ;;  %v2301_v53 = vpop.f32.mrb[3].mxu1  ;;  %v2642_v45 = vld [vmem:[%s3212_s3 + $0xd8] sm:$0xff]   ;;  %v2645_v48 = vld [vmem:[%s3212_s3 + $0xf0] sm:$0xff]  }
 0x1c4   :  { %2354 = vmatprep.subr.bf16.mxu0 %v2675_v0 }
 0x1c6   :  { %2345 = vmatmul.mubr.msk.bf16.vlgmr.msra.gmra.mrb[8].mxu0 %vm136_vm3, %v2602_v50 }
 0x1c7   :  { %2355 = vmatpush3.bf16.msra.mxu0 %v2603_v52  ;;  %2370 = vmatprep.mubr.msk.bf16.mxu0 %vm2676_vm0, %v2675_v0  ;;  %v2646_v52 = vld [vmem:[%s3212_s3 + $0xf8] sm:$0xff]  }
 0x1c8   :  { %2356 = vmatprep.subr.bf16.mxu0 %v2675_v0 }
 0x1cb   :  { %2357 = vmatpush3.bf16.msra.mxu0 %v2604_v54 }
 0x1cc   :  { %2358 = vmatprep.subr.bf16.mxu0 %v2675_v0 }
 0x1cf   :  { %2359 = vmatpush3.bf16.msra.mxu0 %v2605_v55 }
 0x1d0   :  { %2360 = vmatprep.subr.bf16.mxu0 %v2675_v0 }
 0x1d3   :  { %2361 = vmatpush3.bf16.msra.mxu0 %v2606_v56 }
 0x1d4   :  { %2362 = vmatprep.subr.bf16.mxu0 %v2675_v0 }
 0x1d7   :  { %2363 = vmatpush3.bf16.msra.mxu0 %v2607_v57 }
 0x1d8   :  { %2364 = vmatprep.subr.bf16.mxu0 %v2675_v0 }
 0x1db   :  { %2365 = vmatpush3.bf16.msra.mxu0 %v2608_v58 }
 0x1dc   :  { %2366 = vmatprep.subr.bf16.mxu0 %v2675_v0 }
 0x1df   :  { %2367 = vmatpush3.bf16.msra.mxu0 %v2609_v59 }
 0x1e0   :  { %v279_v61 = vpop.f32.mrb[4].mxu1  ;;  %2368 = vmatprep.subr.bf16.mxu0 %v2675_v0 }
 0x1e1   :  { %v2320_v62 = vpop.f32.mrb[5].mxu1 }
 0x1e2   :  { %v282_v63 = vpop.f32.mrb[6].mxu1 }
 0x1e3   :  { %v290_v1 = vpack.c.bf16 %v282_v63, %v279_v61  ;;  %v2321_v2 = vpop.f32.mrb[7].mxu1  ;;  %2369 = vmatpush3.bf16.msra.mxu0 %v2610_v60 }
 0x1e4   :  { %2406 = vmatprep.subr.bf16.mxu0 %v2675_v0  ;;  %v2647_v2 = vld [vmem:[%s3215_s4 + $0x30] sm:$0xff]  }
 0x1e5   :  { %2348 = vmatprep.subr.bf16.mxu1 %v290_v1 }
 0x1e6   :  { %2349 = vmatpush3.bf16.msra.mxu1 %v290_v1  ;;  %2371 = vmatmul.mubr.bf16.vlgmr.msra.gmra.mrb[12].mxu0 %v2804_v29 }
 0x1e7   :  { %2407 = vmatpush3.bf16.msra.mxu0 %v2611_v3  ;;  %2422 = vmatprep.mubr.msk.bf16.mxu0 %vm2676_vm0, %v2675_v0 }
 0x1e8   :  { %2408 = vmatprep.subr.bf16.mxu0 %v2675_v0 }
 0x1e9   :  { %2351 = vmatmul.mubr.msk.bf16.vlgmr.msra.gmra.mrb[8].mxu1 %vm136_vm3, %v2636_v19  ;;  %v2659_v19 = vld [vmem:[%s3212_s3 + $0x1b0] sm:$0xff]  }
 0x1ea   :  { %2376 = vmatprep.mubr.msk.bf16.mxu1 %vm136_vm3, %v2637_v30  ;;  %v2664_v30 = vld [vmem:[%s3215_s4 + $0x78] sm:$0xff]  }
 0x1eb   :  { %2409 = vmatpush3.bf16.msra.mxu0 %v2612_v4 }
 0x1ec   :  { %2410 = vmatprep.subr.bf16.mxu0 %v2675_v0 }
 0x1ef   :  { %2411 = vmatpush3.bf16.msra.mxu0 %v2613_v5 }
 0x1f0   :  { %2412 = vmatprep.subr.bf16.mxu0 %v2675_v0 }
 0x1f3   :  { %2413 = vmatpush3.bf16.msra.mxu0 %v2614_v6 }
 0x1f4   :  { %2414 = vmatprep.subr.bf16.mxu0 %v2675_v0 }
 0x1f7   :  { %2415 = vmatpush3.bf16.msra.mxu0 %v2615_v7 }
 0x1f8   :  { %2416 = vmatprep.subr.bf16.mxu0 %v2675_v0 }
 0x1fb   :  { %2417 = vmatpush3.bf16.msra.mxu0 %v2616_v8  ;;  %v2648_v8 = vld [vmem:[%s3215_s4 + $0x38] sm:$0xff]  }
 0x1fc   :  { %2418 = vmatprep.subr.bf16.mxu0 %v2675_v0 }
 0x1ff   :  { %2419 = vmatpush3.bf16.msra.mxu0 %v2617_v9  ;;  %v2649_v9 = vld [vmem:[%s3215_s4 + $0x40] sm:$0xff]  }
 0x200   :  { %2420 = vmatprep.subr.bf16.mxu0 %v2675_v0 }
 0x203   :  { %2421 = vmatpush3.bf16.msra.mxu0 %v2618_v10  ;;  %v2650_v10 = vld [vmem:[%s3215_s4 + $0x48] sm:$0xff]  }
 0x204   :  { %2432 = vmatprep.subr.bf16.mxu0 %v2675_v0 }
 0x206   :  { %2423 = vmatmul.mubr.bf16.vlgmr.msra.gmra.mrb[16].mxu0 %v2804_v29 }
 0x207   :  { %2433 = vmatpush3.bf16.msra.mxu0 %v2619_v11  ;;  %2448 = vmatprep.mubr.msk.bf16.mxu0 %vm2676_vm0, %v2675_v0  ;;  %v2651_v11 = vld [vmem:[%s3215_s4 + $0x50] sm:$0xff]  }
 0x208   :  { %2434 = vmatprep.subr.bf16.mxu0 %v2675_v0 }
 0x20b   :  { %2435 = vmatpush3.bf16.msra.mxu0 %v2620_v12  ;;  %v2652_v12 = vld [vmem:[%s3215_s4 + $0x58] sm:$0xff]  }
 0x20c   :  { %2436 = vmatprep.subr.bf16.mxu0 %v2675_v0 }
 0x20f   :  { %2437 = vmatpush3.bf16.msra.mxu0 %v2621_v13  ;;  %v2653_v13 = vld [vmem:[%s3212_s3 + $0x180] sm:$0xff]  }
 0x210   :  { %2438 = vmatprep.subr.bf16.mxu0 %v2675_v0 }
 0x213   :  { %2439 = vmatpush3.bf16.msra.mxu0 %v2622_v14  ;;  %v2654_v14 = vld [vmem:[%s3212_s3 + $0x188] sm:$0xff]  }
 0x214   :  { %2440 = vmatprep.subr.bf16.mxu0 %v2675_v0 }
 0x217   :  { %2441 = vmatpush3.bf16.msra.mxu0 %v2623_v15  ;;  %v2655_v15 = vld [vmem:[%s3212_s3 + $0x190] sm:$0xff]  }
 0x218   :  { %2442 = vmatprep.subr.bf16.mxu0 %v2675_v0 }
 0x21b   :  { %2443 = vmatpush3.bf16.msra.mxu0 %v2624_v16  ;;  %v2656_v16 = vld [vmem:[%s3212_s3 + $0x198] sm:$0xff]  }
 0x21c   :  { %2444 = vmatprep.subr.bf16.mxu0 %v2675_v0 }
 0x21f   :  { %2445 = vmatpush3.bf16.msra.mxu0 %v2625_v17  ;;  %v2657_v17 = vld [vmem:[%s3212_s3 + $0x1a0] sm:$0xff]  }
 0x220   :  { %2446 = vmatprep.subr.bf16.mxu0 %v2675_v0 }
 0x223   :  { %2447 = vmatpush3.bf16.msra.mxu0 %v2626_v20  ;;  %v2660_v20 = vld [vmem:[%s3212_s3 + $0x1b8] sm:$0xff]  }
 0x224   :  { %2484 = vmatprep.subr.bf16.mxu0 %v2675_v0 }
 0x226   :  { %2449 = vmatmul.mubr.bf16.vlgmr.msra.gmra.mrb[20].mxu0 %v2804_v29 }
 0x227   :  { %2485 = vmatpush3.bf16.msra.mxu0 %v2627_v21  ;;  %2500 = vmatprep.mubr.msk.bf16.mxu0 %vm2676_vm0, %v2675_v0  ;;  %v2661_v21 = vld [vmem:[%s3215_s4 + $0x60] sm:$0xff]  }
 0x228   :  { %2486 = vmatprep.subr.bf16.mxu0 %v2675_v0 }
 0x22b   :  { %2487 = vmatpush3.bf16.msra.mxu0 %v2628_v22 }
 0x22c   :  { %2488 = vmatprep.subr.bf16.mxu0 %v2675_v0 }
 0x22f   :  { %2489 = vmatpush3.bf16.msra.mxu0 %v2629_v23 }
 0x230   :  { %2490 = vmatprep.subr.bf16.mxu0 %v2675_v0 }
 0x233   :  { %2491 = vmatpush3.bf16.msra.mxu0 %v2630_v24 }
 0x234   :  { %2492 = vmatprep.subr.bf16.mxu0 %v2675_v0 }
 0x237   :  { %2493 = vmatpush3.bf16.msra.mxu0 %v2631_v25 }
 0x238   :  { %2494 = vmatprep.subr.bf16.mxu0 %v2675_v0 }
 0x23b   :  { %2495 = vmatpush3.bf16.msra.mxu0 %v2632_v26 }
 0x23c   :  { %2496 = vmatprep.subr.bf16.mxu0 %v2675_v0 }
 0x23f   :  { %2497 = vmatpush3.bf16.msra.mxu0 %v2633_v27  ;;  %v2662_v27 = vld [vmem:[%s3215_s4 + $0x68] sm:$0xff]  }
 0x240   :  { %2498 = vmatprep.subr.bf16.mxu0 %v2675_v0 }
 0x243   :  { %2499 = vmatpush3.bf16.msra.mxu0 %v2634_v28  ;;  %v2663_v28 = vld [vmem:[%s3215_s4 + $0x70] sm:$0xff]  }
 0x244   :  { %2536 = vmatprep.subr.bf16.mxu0 %v2675_v0 }
 0x246   :  { %2501 = vmatmul.mubr.bf16.vlgmr.msra.gmra.mrb[24].mxu0 %v2804_v29 }
 0x247   :  { %2540 = vmatprep.mubr.msk.bf16.mxu0 %vm2676_vm0, %v2675_v0 }
 0x299   :  { %v3015_v31 = vpop.f32.mrb[8].mxu0 }
 0x29a   :  { %v3017_v32 = vpop.f32.mrb[9].mxu0 }
 0x29b   :  { %v3019_v33 = vpop.f32.mrb[10].mxu0 }
 0x29c   :  { %v3021_v34 = vpop.f32.mrb[11].mxu0 }
 0x2b9   :  { %v632_v35 = vpop.f32.mrb[12].mxu0 }
 0x2ba   :  { %v2372_v36 = vpop.f32.mrb[13].mxu0 }
 0x2bb   :  { %v635_v37 = vpop.f32.mrb[14].mxu0  ;;  %v2666_v36 = vld [vmem:[%s3212_s3 + $0x208] sm:$0xff]  }
 0x2bc   :  { %v644_v38 = vpack.c.bf16 %v635_v37, %v632_v35  ;;  %v2373_v39 = vpop.f32.mrb[15].mxu0  ;;  %v2665_v35 = vld [vmem:[%s3212_s3 + $0x200] sm:$0xff]   ;;  %v2667_v37 = vld [vmem:[%s3212_s3 + $0x210] sm:$0xff]  }
 0x2bd   :  { %v2669_v39 = vld [vmem:[%s3212_s3 + $0x220] sm:$0xff]  }
 0x2be   :  { %2374 = vmatprep.subr.bf16.mxu1 %v644_v38 }
 0x2bf   :  { %2375 = vmatpush3.bf16.msra.mxu1 %v644_v38  ;;  %v2668_v38 = vld [vmem:[%s3212_s3 + $0x218] sm:$0xff]  }
 0x2c0   :  { %2380 = vmatprep.subr.bf16.mxu1 %v2675_v0 }
 0x2c2   :  { %2377 = vmatmul.mubr.msk.bf16.vlgmr.msra.gmra.mrb[8].mxu1 %vm136_vm3, %v2638_v41  ;;  %v2670_v41 = vld [vmem:[%s3212_s3 + $0x228] sm:$0xff]  }
 0x2c3   :  { %2381 = vmatpush3.bf16.msra.mxu1 %v2639_v42  ;;  %2396 = vmatprep.mubr.msk.bf16.mxu1 %vm2676_vm0, %v2675_v0  ;;  %v2671_v42 = vld [vmem:[%s3212_s3 + $0x230] sm:$0xff]  }
 0x2c4   :  { %2382 = vmatprep.subr.bf16.mxu1 %v2675_v0 }
 0x2c7   :  { %2383 = vmatpush3.bf16.msra.mxu1 %v2640_v43  ;;  %v2672_v43 = vld [vmem:[%s3212_s3 + $0x238] sm:$0xff]  }
 0x2c8   :  { %2384 = vmatprep.subr.bf16.mxu1 %v2675_v0 }
 0x2cb   :  { %2385 = vmatpush3.bf16.msra.mxu1 %v2641_v44  ;;  %v2673_v44 = vld [vmem:[%s3215_s4 + $0x80] sm:$0xff]  }
 0x2cc   :  { %2386 = vmatprep.subr.bf16.mxu1 %v2675_v0 }
 0x2cf   :  { %2387 = vmatpush3.bf16.msra.mxu1 %v2642_v45  ;;  %v1800_v45 = vld [vmem:[%s3211_s5] sm:$0xff] }
 0x2d0   :  { %2388 = vmatprep.subr.bf16.mxu1 %v2675_v0  ;;  %1806 = vperm.xlu1 %2580, %v1800_v45  }
 0x2d3   :  { %2389 = vmatpush3.bf16.msra.mxu1 %v2643_v46  ;;  %v1801_v46 = vld [vmem:[%s3211_s5 + $0x8] sm:$0xff] }
 0x2d4   :  { %2390 = vmatprep.subr.bf16.mxu1 %v2675_v0  ;;  %1811 = vperm.xlu1 %2580, %v1801_v46  }
 0x2d7   :  { %2391 = vmatpush3.bf16.msra.mxu1 %v2644_v47  ;;  %v1835_v47 = vld [vmem:[%s3217_s9] sm:$0xff] }
 0x2d8   :  { %2392 = vmatprep.subr.bf16.mxu1 %v2675_v0 }
 0x2d9   :  { %v994_v49 = vpop.f32.mrb[16].mxu0 }
 0x2da   :  { %v2424_v50 = vpop.f32.mrb[17].mxu0 }
 0x2db   :  { %2393 = vmatpush3.bf16.msra.mxu1 %v2645_v48  ;;  %v997_v51 = vpop.f32.mrb[18].mxu0 }
 0x2dc   :  { %v1006_v53 = vpack.c.bf16 %v997_v51, %v994_v49  ;;  %v2425_v54 = vpop.f32.mrb[19].mxu0  ;;  %2394 = vmatprep.subr.bf16.mxu1 %v2675_v0 }
 0x2df   :  { %2395 = vmatpush3.bf16.msra.mxu1 %v2646_v52 }
 0x2e2   :  { %2397 = vmatmul.mubr.bf16.vlgmr.msra.gmra.mrb[12].mxu1 %v2804_v29 }
 0x2e3   :  { %2402 = vmatprep.mubr.msk.bf16.mxu1 %vm136_vm3, %v2647_v2 }
 0x2f9   :  { %v1175_v55 = vpop.f32.mrb[20].mxu0 }
 0x2fa   :  { %v2450_v56 = vpop.f32.mrb[21].mxu0 }
 0x2fb   :  { %v1178_v57 = vpop.f32.mrb[22].mxu0 }
 0x2fc   :  { %v1187_v58 = vpack.c.bf16 %v1178_v57, %v1175_v55  ;;  %v2451_v59 = vpop.f32.mrb[23].mxu0 }
 0x319   :  { %v1537_v60 = vpop.f32.mrb[24].mxu0 }
 0x31a   :  { %v2502_v61 = vpop.f32.mrb[25].mxu0 }
 0x31b   :  { %v1540_v62 = vpop.f32.mrb[26].mxu0 }
 0x31c   :  { %v3062_v63 = vpack.c.bf16 %v1540_v62, %v1537_v60  ;;  %v2503_v1 = vpop.f32.mrb[27].mxu0 }
 0x34f   :  { %v1807_v54 = vpop.permute.xlu1 %1806 }
 0x353   :  { %v1812_v55 = vpop.permute.xlu1 %1811 }
 0x3b5   :  { %v813_v3 = vpop.f32.mrb[12].mxu1 }
 0x3b6   :  { %v2398_v4 = vpop.f32.mrb[13].mxu1 }
 0x3b7   :  { %v816_v5 = vpop.f32.mrb[14].mxu1 }
 0x3b8   :  { %v825_v6 = vpack.c.bf16 %v816_v5, %v813_v3  ;;  %v2399_v7 = vpop.f32.mrb[15].mxu1 }
 0x3ba   :  { %2400 = vmatprep.subr.bf16.mxu1 %v825_v6 }
 0x3bb   :  { %2401 = vmatpush3.bf16.msra.mxu1 %v825_v6 }
 0x3bc   :  { %2426 = vmatprep.subr.bf16.mxu1 %v1006_v53 }
 0x3be   :  { %2403 = vmatmul.mubr.msk.bf16.vlgmr.msra.gmra.mrb[8].mxu1 %vm136_vm3, %v2648_v8 }
 0x3bf   :  { %2427 = vmatpush3.bf16.msra.mxu1 %v1006_v53  ;;  %2428 = vmatprep.mubr.msk.bf16.mxu1 %vm136_vm3, %v2649_v9  ;;  %v2674_v53 = vld [vmem:[%s3215_s4 + $0x88] sm:$0xff]  }
 0x3c0   :  { %2452 = vmatprep.subr.bf16.mxu1 %v1187_v58 }
 0x3ca   :  { %2429 = vmatmul.mubr.msk.bf16.vlgmr.msra.gmra.mrb[8].mxu1 %vm136_vm3, %v2650_v10 }
 0x3cb   :  { %2453 = vmatpush3.bf16.msra.mxu1 %v1187_v58  ;;  %2454 = vmatprep.mubr.msk.bf16.mxu1 %vm136_vm3, %v2651_v11 }
 0x3cc   :  { %2458 = vmatprep.subr.bf16.mxu1 %v2675_v0 }
 0x3d6   :  { %2455 = vmatmul.mubr.msk.bf16.vlgmr.msra.gmra.mrb[8].mxu1 %vm136_vm3, %v2652_v12 }
 0x3d7   :  { %2459 = vmatpush3.bf16.msra.mxu1 %v2653_v13  ;;  %2474 = vmatprep.mubr.msk.bf16.mxu1 %vm2676_vm0, %v2675_v0 }
 0x3d8   :  { %2460 = vmatprep.subr.bf16.mxu1 %v2675_v0 }
 0x3db   :  { %2461 = vmatpush3.bf16.msra.mxu1 %v2654_v14 }
 0x3dc   :  { %2462 = vmatprep.subr.bf16.mxu1 %v2675_v0 }
 0x3df   :  { %2463 = vmatpush3.bf16.msra.mxu1 %v2655_v15 }
 0x3e0   :  { %2464 = vmatprep.subr.bf16.mxu1 %v2675_v0 }
 0x3e3   :  { %2465 = vmatpush3.bf16.msra.mxu1 %v2656_v16 }
 0x3e4   :  { %2466 = vmatprep.subr.bf16.mxu1 %v2675_v0 }
 0x3e7   :  { %2467 = vmatpush3.bf16.msra.mxu1 %v2657_v17 }
 0x3e8   :  { %2468 = vmatprep.subr.bf16.mxu1 %v2675_v0 }
 0x3eb   :  { %2469 = vmatpush3.bf16.msra.mxu1 %v2658_v18 }
 0x3ec   :  { %2470 = vmatprep.subr.bf16.mxu1 %v2675_v0 }
 0x3ef   :  { %2471 = vmatpush3.bf16.msra.mxu1 %v2659_v19 }
 0x3f0   :  { %2472 = vmatprep.subr.bf16.mxu1 %v2675_v0 }
 0x3f3   :  { %2473 = vmatpush3.bf16.msra.mxu1 %v2660_v20 }
 0x3f6   :  { %2475 = vmatmul.mubr.bf16.vlgmr.msra.gmra.mrb[16].mxu1 %v2804_v29 }
 0x3f7   :  { %2480 = vmatprep.mubr.msk.bf16.mxu1 %vm136_vm3, %v2661_v21 }
 0x4c9   :  { %v1356_v22 = vpop.f32.mrb[16].mxu1 }
 0x4ca   :  { %v2476_v23 = vpop.f32.mrb[17].mxu1 }
 0x4cb   :  { %v1359_v24 = vpop.f32.mrb[18].mxu1 }
 0x4cc   :  { %v1368_v25 = vpack.c.bf16 %v1359_v24, %v1356_v22  ;;  %v2477_v26 = vpop.f32.mrb[19].mxu1 }
 0x4ce   :  { %2478 = vmatprep.subr.bf16.mxu1 %v1368_v25 }
 0x4cf   :  { %2479 = vmatpush3.bf16.msra.mxu1 %v1368_v25 }
 0x4d0   :  { %2504 = vmatprep.subr.bf16.mxu1 %v3062_v63 }
 0x4d2   :  { %2481 = vmatmul.mubr.msk.bf16.vlgmr.msra.gmra.mrb[8].mxu1 %vm136_vm3, %v2662_v27 }
 0x4d3   :  { %2505 = vmatpush3.bf16.msra.mxu1 %v3062_v63  ;;  %2506 = vmatprep.mubr.msk.bf16.mxu1 %vm136_vm3, %v2663_v28 }
 0x4d4   :  { %2510 = vmatprep.subr.bf16.mxu1 %v2675_v0 }
 0x4de   :  { %2507 = vmatmul.mubr.msk.bf16.vlgmr.msra.gmra.mrb[8].mxu1 %vm136_vm3, %v2664_v30 }
 0x4df   :  { %2511 = vmatpush3.bf16.msra.mxu1 %v2665_v35  ;;  %2526 = vmatprep.mubr.msk.bf16.mxu1 %vm2676_vm0, %v2675_v0 }
 0x4e0   :  { %2512 = vmatprep.subr.bf16.mxu1 %v2675_v0 }
 0x4e3   :  { %2513 = vmatpush3.bf16.msra.mxu1 %v2666_v36 }
 0x4e4   :  { %2514 = vmatprep.subr.bf16.mxu1 %v2675_v0 }
 0x4e7   :  { %2515 = vmatpush3.bf16.msra.mxu1 %v2667_v37 }
 0x4e8   :  { %2516 = vmatprep.subr.bf16.mxu1 %v2675_v0 }
 0x4eb   :  { %2517 = vmatpush3.bf16.msra.mxu1 %v2668_v38 }
 0x4ec   :  { %2518 = vmatprep.subr.bf16.mxu1 %v2675_v0 }
 0x4ef   :  { %2519 = vmatpush3.bf16.msra.mxu1 %v2669_v39 }
 0x4f0   :  { %2520 = vmatprep.subr.bf16.mxu1 %v2675_v0 }
 0x4f3   :  { %2521 = vmatpush3.bf16.msra.mxu1 %v2670_v41 }
 0x4f4   :  { %2522 = vmatprep.subr.bf16.mxu1 %v2675_v0 }
 0x4f7   :  { %2523 = vmatpush3.bf16.msra.mxu1 %v2671_v42 }
 0x4f8   :  { %2524 = vmatprep.subr.bf16.mxu1 %v2675_v0 }
 0x4fb   :  { %2525 = vmatpush3.bf16.msra.mxu1 %v2672_v43 }
 0x4fe   :  { %2527 = vmatmul.mubr.bf16.vlgmr.msra.gmra.mrb[20].mxu1 %v2804_v29  ;;  %v1803_v29 = vld [vmem:[%s3211_s5 + $0x18] sm:$0xff] }
 0x4ff   :  { %2532 = vmatprep.mubr.msk.bf16.mxu1 %vm136_vm3, %v2673_v44  ;;  %1821 = vperm.xlu1 %2580, %v1803_v29  }
 0x503   :  { %1838 = vperm.xlu1 %2580, %v1835_v47  }
 0x57e   :  { %v1822_v3 = vpop.permute.xlu1 %1821 }
 0x5d1   :  { %v1718_v48 = vpop.f32.mrb[20].mxu1 }
 0x5d2   :  { %v2528_v49 = vpop.f32.mrb[21].mxu1 }
 0x5d3   :  { %v1721_v50 = vpop.f32.mrb[22].mxu1 }
 0x5d4   :  { %v1730_v51 = vpack.c.bf16 %v1721_v50, %v1718_v48  ;;  %v2529_v52 = vpop.f32.mrb[23].mxu1 }
 0x5d6   :  { %2530 = vmatprep.subr.bf16.mxu1 %v1730_v51 }
 0x5d7   :  { %2531 = vmatpush3.bf16.msra.mxu1 %v1730_v51 }
 0x5da   :  { %2533 = vmatmul.mubr.msk.bf16.vlgmr.msra.gmra.mrb[8].mxu1 %vm136_vm3, %v2674_v53 }
 0x6ad   :  { %v2534_v56 = vpop.f32.mrb[8].mxu1 }
 0x6ae   :  { %v2544_v57 = vadd.f32 %v2534_v56, %v3015_v31  ;;  %v1781_v58 = vpop.f32.mrb[9].mxu1 }
 0x6af   :  { %v2545_v59 = vadd.f32 %v1781_v58, %v3017_v32  ;;  %v2535_v60 = vpop.f32.mrb[10].mxu1  ;;  %v1839_v32 = vpop.permute.xlu1 %1838 }
 0x6b0   :  { %v1826_v61 = vadd.f32 %v2544_v57, %v2851_v40  ;;  %v2546_v62 = vadd.f32 %v2535_v60, %v3019_v33  ;;  %v1784_v63 = vpop.f32.mrb[11].mxu1  ;;  %v1834_v40 = vld [vmem:[%s3218_s8] sm:$0xf] }
 0x6b1   :  { %v1824_v1 = vadd.f32 %v2545_v59, %v1807_v54  ;;  %v2547_v2 = vadd.f32 %v1784_v63, %v3021_v34 }
 0x6b2   :  { %v1827_v4 = vadd.f32 %v2546_v62, %v1822_v3  ;;  %v1830_v6 = vmax.f32 %v1826_v61, 0.0 }
 0x6b3   :  { %v1825_v5 = vadd.f32 %v2547_v2, %v1812_v55  ;;  %v1828_v8 = vmax.f32 %v1824_v1, 0.0 }
 0x6b4   :  { %v1831_v7 = vmax.f32 %v1827_v4, 0.0 }
 0x6b5   :  { %v1829_v9 = vmax.f32 %v1825_v5, 0.0 }
 0x6b6   :  { %v1833_v31 = vpack.c.bf16 %v1831_v7, %v1830_v6 }
 0x6b7   :  { %v1832_v10 = vpack.c.bf16 %v1829_v9, %v1828_v8 }
 0x6b9   :  { %2537 = vmatpush3.bf16.msra.mxu0 %v1832_v10 }
 0x6ba   :  { %2538 = vmatprep.subr.bf16.mxu0 %v2675_v0 }
 0x6bd   :  { %2539 = vmatpush3.bf16.msra.mxu0 %v1833_v31 }
 0x6c0   :  { %2541 = vmatmul.mubr.msk.bf16.vlgmr.msra.gmra.mrb[28].mxu0 %vm1841_vm4, %v1834_v40 }
 0x793   :  { %v1879_v33 = vpop.f32.mrb[28].mxu0 }
 0x794   :  { %v1880_v34 = vadd.f32 %v1879_v33, %v1839_v32  ;;  %v2542_v11 = vpop.f32.mrb[29].mxu0 }
 0x795   :  { %v1882_v12 = vpop.f32.mrb[30].mxu0 }
 0x796   :  { %1885 = vst.msk [vmem:[%s3219_s11] sm:$0xff] %vm1841_vm4, %v1880_v34  ;;  %v2543_v13 = vpop.f32.mrb[31].mxu0 }

</bundles_post_ra>
